<compile_context>
chip_gen: v7x
topology: tpu7x:2x2x1
jax: 0.10.0
libtpu: 0.0.40
codegen_flags: <defaults>
</compile_context>

<pallas_src>
import functools

import jax
import jax.numpy as jnp
from jax.experimental import pallas as pl
from jax.experimental.pallas import tpu as pltpu

BN_EPS = 1e-5
VMEM_LIMIT = 48 * 1024 * 1024   # fits v5e/v6e (128 MiB) and v7x (64 MiB physical)


# ---------------------------------------------------------------------------
# helpers
# ---------------------------------------------------------------------------
def _round_up(v, m):
    return ((v + m - 1) // m) * m


def _pad_to(arr, shape):
    return jnp.pad(arr, [(0, t - s) for s, t in zip(arr.shape, shape)])


# ---------------------------------------------------------------------------
# Kernels
# ---------------------------------------------------------------------------
def _sage_layer_kernel(a_ref, xn_ref, xs_ref, wl_ref, wr_ref, b_ref, o_ref,
                       acc_ref, *, apply_relu: bool):
    # grid = (rows i, contraction k); accumulate mean-aggregation A@X over k.
    k = pl.program_id(1)

    @pl.when(k == 0)
    def _():
        acc_ref[...] = jnp.zeros_like(acc_ref)

    acc_ref[...] += jnp.dot(a_ref[...], xn_ref[...],
                            preferred_element_type=jnp.float32)

    # PyG SAGEConv(aggr='mean'): out = lin_l(mean_j x_j) + lin_r(x_i); BN folded into W/b.
    @pl.when(k == pl.num_programs(1) - 1)
    def _():
        agg = acc_ref[...].astype(wl_ref.dtype)
        out = (jnp.dot(agg, wl_ref[...], preferred_element_type=jnp.float32)
               + jnp.dot(xs_ref[...], wr_ref[...], preferred_element_type=jnp.float32)
               + b_ref[...])
        if apply_relu:
            out = jnp.maximum(out, 0.0)      # ReLU (Dropout is identity in eval)
        o_ref[...] = out


def _decoder_kernel(hs_ref, hd_ref, w1a_ref, w1b_ref, b1_ref, w2_ref, b2_ref, o_ref):
    # Linear(2H, H) as two HxH halves (no concat), ReLU, Dropout(eval: id), Linear(H, 1)
    t = (jnp.dot(hs_ref[...], w1a_ref[...], preferred_element_type=jnp.float32)
         + jnp.dot(hd_ref[...], w1b_ref[...], preferred_element_type=jnp.float32)
         + b1_ref[...])
    t = jnp.maximum(t, 0.0)
    o_ref[...] = (jnp.dot(t.astype(w2_ref.dtype), w2_ref[...],
                          preferred_element_type=jnp.float32)
                  + b2_ref[...])


# ---------------------------------------------------------------------------
# pallas_call wrappers
# ---------------------------------------------------------------------------
def sage_layer(a_mean, x, w_l, w_r, b, apply_relu, *, tm, tk):
    n_pad = a_mean.shape[0]
    f_pad = x.shape[1]
    h_pad = w_l.shape[1]
    grid = (n_pad // tm, n_pad // tk)

    flops = 2 * n_pad * n_pad * f_pad + 4 * n_pad * f_pad * h_pad
    bytes_accessed = (n_pad * n_pad * 2            # A (bf16)
                      + 2 * n_pad * f_pad * 2      # X neighbor + self (bf16)
                      + 2 * f_pad * h_pad * 2      # W_l, W_r (bf16)
                      + n_pad * h_pad * 4)         # output (f32)

    return pl.pallas_call(
        functools.partial(_sage_layer_kernel, apply_relu=apply_relu),
        out_shape=jax.ShapeDtypeStruct((n_pad, h_pad), jnp.float32),
        grid=grid,
        in_specs=[
            pl.BlockSpec((tm, tk), lambda i, k: (i, k)),        # A_mean tile
            pl.BlockSpec((tk, f_pad), lambda i, k: (k, 0)),     # X (neighbor rows)
            pl.BlockSpec((tm, f_pad), lambda i, k: (i, 0)),     # X (self rows)
            pl.BlockSpec((f_pad, h_pad), lambda i, k: (0, 0)),  # W_l (BN-folded)
            pl.BlockSpec((f_pad, h_pad), lambda i, k: (0, 0)),  # W_r (BN-folded)
            pl.BlockSpec((1, h_pad), lambda i, k: (0, 0)),      # bias (BN-folded)
        ],
        out_specs=pl.BlockSpec((tm, h_pad), lambda i, k: (i, 0)),
        scratch_shapes=[pltpu.VMEM((tm, f_pad), jnp.float32)],
        compiler_params=pltpu.CompilerParams(
            dimension_semantics=("parallel", "arbitrary"),
            vmem_limit_bytes=VMEM_LIMIT),
        cost_estimate=pl.CostEstimate(flops=flops, transcendentals=0,
                                      bytes_accessed=bytes_accessed),
    )(a_mean, x, x, w_l, w_r, b)


def decoder(h_src, h_dst, w1a, w1b, b1, w2, b2, *, tl):
    l_pad = h_src.shape[0]
    h_pad = w1a.shape[0]
    out_w = w2.shape[1]                 # 128 (lane-dense; real width is 1)
    grid = (l_pad // tl,)

    return pl.pallas_call(
        _decoder_kernel,
        out_shape=jax.ShapeDtypeStruct((l_pad, out_w), jnp.float32),
        grid=grid,
        in_specs=[
            pl.BlockSpec((tl, h_pad), lambda i: (i, 0)),
            pl.BlockSpec((tl, h_pad), lambda i: (i, 0)),
            pl.BlockSpec((h_pad, h_pad), lambda i: (0, 0)),
            pl.BlockSpec((h_pad, h_pad), lambda i: (0, 0)),
            pl.BlockSpec((1, h_pad), lambda i: (0, 0)),
            pl.BlockSpec((h_pad, out_w), lambda i: (0, 0)),
            pl.BlockSpec((1, out_w), lambda i: (0, 0)),
        ],
        out_specs=pl.BlockSpec((tl, out_w), lambda i: (i, 0)),
        compiler_params=pltpu.CompilerParams(
            dimension_semantics=("parallel",),
            vmem_limit_bytes=VMEM_LIMIT),
    )(h_src, h_dst, w1a, w1b, b1, w2, b2)


# ---------------------------------------------------------------------------
# Full forward (eval mode)
# ---------------------------------------------------------------------------
def simple_graphsage_forward(params, x, edge_index, edge_label_index):
    n, f_in = x.shape
    hidden = params["conv1_wl"].shape[1]

    # lane dims padded to multiples of 128; node rows padded to the chosen tile
    f_pad = _round_up(f_in, 128)
    h_pad = _round_up(hidden, 128)
    tile = 512 if n > 512 else _round_up(max(n, 8), 128)   # 512 keeps v7x VMEM happy
    n_pad = _round_up(n, tile)

    # ---- dense row-normalized adjacency (plain-JAX glue: scatter has no rectangular BlockSpec)
    # TODO(synk): for large graphs replace this O(N^2) dense adjacency with a CSR /
    # scalar-prefetch gather aggregation path; dense MXU matmul is kept for small N.
    src, dst = edge_index[0], edge_index[1]
    a = jnp.zeros((n_pad, n_pad), jnp.float32).at[dst, src].add(1.0)
    deg = a.sum(axis=1, keepdims=True)
    a_mean = (a / jnp.maximum(deg, 1.0)).astype(jnp.bfloat16)

    x_p = _pad_to(x.astype(jnp.float32), (n_pad, f_pad)).astype(jnp.bfloat16)

    def fold_bn(w_l, w_r, b, gamma, beta, mu, var):
        # eval-mode BatchNorm1d folded into the linear weights / bias
        scale = gamma * jax.lax.rsqrt(var + BN_EPS)
        return w_l * scale, w_r * scale, (b - mu) * scale + beta

    wl1, wr1, b1 = fold_bn(params["conv1_wl"], params["conv1_wr"], params["conv1_b"],
                           params["bn1_gamma"], params["bn1_beta"],
                           params["bn1_mean"], params["bn1_var"])
    wl1 = _pad_to(wl1, (f_pad, h_pad)).astype(jnp.bfloat16)
    wr1 = _pad_to(wr1, (f_pad, h_pad)).astype(jnp.bfloat16)
    b1 = _pad_to(b1.reshape(1, hidden), (1, h_pad))

    wl2, wr2, b2 = fold_bn(params["conv2_wl"], params["conv2_wr"], params["conv2_b"],
                           params["bn2_gamma"], params["bn2_beta"],
                           params["bn2_mean"], params["bn2_var"])
    wl2 = _pad_to(wl2, (h_pad, h_pad)).astype(jnp.bfloat16)
    wr2 = _pad_to(wr2, (h_pad, h_pad)).astype(jnp.bfloat16)
    b2 = _pad_to(b2.reshape(1, hidden), (1, h_pad))

    wl3 = _pad_to(params["conv3_wl"], (h_pad, h_pad)).astype(jnp.bfloat16)
    wr3 = _pad_to(params["conv3_wr"], (h_pad, h_pad)).astype(jnp.bfloat16)
    b3 = _pad_to(params["conv3_b"].reshape(1, hidden), (1, h_pad))

    h1 = sage_layer(a_mean, x_p, wl1, wr1, b1, True, tm=tile, tk=tile).astype(jnp.bfloat16)
    h2 = sage_layer(a_mean, h1, wl2, wr2, b2, True, tm=tile, tk=tile).astype(jnp.bfloat16)
    h3 = sage_layer(a_mean, h2, wl3, wr3, b3, False, tm=tile, tk=tile)

    # ---- decoder: gather endpoint rows (glue), concat-free two-input MLP kernel ----
    s, d = edge_label_index[0], edge_label_index[1]
    num_l = s.shape[0]
    tl = min(512, _round_up(num_l, 16))
    l_pad = _round_up(num_l, tl)
    h_src = _pad_to(h3[s], (l_pad, h_pad)).astype(jnp.bfloat16)
    h_dst = _pad_to(h3[d], (l_pad, h_pad)).astype(jnp.bfloat16)

    w1a = _pad_to(params["dec_w1"][:hidden], (h_pad, h_pad)).astype(jnp.bfloat16)
    w1b = _pad_to(params["dec_w1"][hidden:], (h_pad, h_pad)).astype(jnp.bfloat16)
    b1d = _pad_to(params["dec_b1"].reshape(1, hidden), (1, h_pad))
    w2 = _pad_to(params["dec_w2"], (h_pad, 128)).astype(jnp.bfloat16)    # lane-dense out
    b2d = _pad_to(params["dec_b2"].reshape(1, 1), (1, 128))

    out = decoder(h_src, h_dst, w1a, w1b, b1d, w2, b2d, tl=tl)
    return out[:num_l, 0]   # .view(-1)


# ---------------------------------------------------------------------------
# Deterministic parameter init + example run
# ---------------------------------------------------------------------------
def init_params(key, in_feats, hidden):
    ks = jax.random.split(key, 16)
    g = lambda k, shape: (0.1 * jax.random.normal(k, shape)).astype(jnp.float32)
    return {
        # conv1 / conv2 / conv3 : W_l (neighbors), W_r (self), bias (lin_l only, as in PyG)
        "conv1_wl": g(ks[0], (in_feats, hidden)),
        "conv1_wr": g(ks[1], (in_feats, hidden)),
        "conv1_b":  g(ks[2], (hidden,)),
        "conv2_wl": g(ks[3], (hidden, hidden)),
        "conv2_wr": g(ks[4], (hidden, hidden)),
        "conv2_b":  g(ks[5], (hidden,)),
        "conv3_wl": g(ks[6], (hidden, hidden)),
        "conv3_wr": g(ks[7], (hidden, hidden)),
        "conv3_b":  g(ks[8], (hidden,)),
        # BatchNorm1d (eval-mode running stats; variance kept positive)
        "bn1_gamma": 1.0 + g(ks[9], (hidden,)),
        "bn1_beta":  g(ks[10], (hidden,)),
        "bn1_mean":  g(ks[11], (hidden,)),
        "bn1_var":   jnp.abs(1.0 + g(ks[12], (hidden,))),
        "bn2_gamma": 1.0 + g(ks[13], (hidden,)),
        "bn2_beta":  g(ks[14], (hidden,)),
        "bn2_mean":  g(ks[15], (hidden,)),
        "bn2_var":   jnp.abs(1.0 + g(ks[12], (hidden,)) * 0.5),
        # decoder: Linear(2H, H) -> ReLU -> Dropout -> Linear(H, 1)
        "dec_w1": g(ks[0], (2 * hidden, hidden)),
        "dec_b1": g(ks[1], (hidden,)),
        "dec_w2": g(ks[2], (hidden, 1)),
        "dec_b2": g(ks[3], (1,)),
    }


if __name__ == "__main__":
    key = jax.random.PRNGKey(0)
    k_x, k_e, k_el, k_p = jax.random.split(key, 4)

    N, IN_FEATS, HIDDEN = 16, 8, 32   # small shapes (module default hidden=128 scaled down)
    E, L = 40, 12

    x = jax.random.normal(k_x, (N, IN_FEATS), dtype=jnp.float32)
    edge_index = jax.random.randint(k_e, (2, E), 0, N, dtype=jnp.int32)
    edge_label_index = jax.random.randint(k_el, (2, L), 0, N, dtype=jnp.int32)

    params = init_params(k_p, IN_FEATS, HIDDEN)

    fwd = jax.jit(simple_graphsage_forward)
    out = fwd(params, x, edge_index, edge_label_index)
    jax.block_until_ready(out)

    assert out.shape == (L,), out.shape
    assert bool(jnp.all(jnp.isfinite(out)))
    print("KERNEL_OK")
</pallas_src>

<mosaic_0001>
module attributes {stable_mosaic.version = 11 : i64} {
  func.func @_sage_layer_kernel(%arg0: i32, %arg1: i32, %arg2: memref<128x128xbf16, #tpu.memory_space<vmem>>, %arg3: memref<128x128xbf16, #tpu.memory_space<vmem>>, %arg4: memref<128x128xbf16, #tpu.memory_space<vmem>>, %arg5: memref<128x128xbf16, #tpu.memory_space<vmem>>, %arg6: memref<128x128xbf16, #tpu.memory_space<vmem>>, %arg7: memref<1x128xf32, #tpu.memory_space<vmem>>, %arg8: memref<128x128xf32, #tpu.memory_space<vmem>>, %arg9: memref<128x128xf32, #tpu.memory_space<vmem>>) attributes {dimension_semantics = [#tpu.dimension_semantics<parallel>, #tpu.dimension_semantics<arbitrary>], iteration_bounds = array<i64: 1, 1>, scalar_prefetch = 0 : i64, scratch_operands = 1 : i64, tpu.core_type = #tpu.core_type<tc>, window_params = [{transform_indices = @transform_0, window_bounds = array<i64: 128, 128>}, {transform_indices = @transform_1, window_bounds = array<i64: 128, 128>}, {transform_indices = @transform_2, window_bounds = array<i64: 128, 128>}, {pipeline_mode = #tpu.pipeline_mode<synchronous>, transform_indices = @transform_3, window_bounds = array<i64: 128, 128>}, {pipeline_mode = #tpu.pipeline_mode<synchronous>, transform_indices = @transform_4, window_bounds = array<i64: 128, 128>}, {pipeline_mode = #tpu.pipeline_mode<synchronous>, transform_indices = @transform_5, window_bounds = array<i64: 1, 128>}, {transform_indices = @transform_6, window_bounds = array<i64: 128, 128>}]} {
    %c0_i32 = arith.constant 0 : i32
    %0 = arith.cmpi eq, %arg1, %c0_i32 : i32
    %1 = arith.extui %0 : i1 to i32
    %c0_i32_0 = arith.constant 0 : i32
    %2 = arith.cmpi ne, %1, %c0_i32_0 : i32
    scf.if %2 {
      %cst_10 = arith.constant 0.000000e+00 : f32
      %12 = vector.broadcast %cst_10 : f32 to vector<128x128xf32>
      %c0_11 = arith.constant 0 : index
      %c0_12 = arith.constant 0 : index
      %13 = vector.load %arg9[%c0_11, %c0_12] : memref<128x128xf32, #tpu.memory_space<vmem>>, vector<128x128xf32>
      tpu.vector_store %arg9[%c0_11, %c0_12], %12 {strides = array<i32>} : memref<128x128xf32, #tpu.memory_space<vmem>>, vector<128x128xf32>,
    } else {
    }
    %c0 = arith.constant 0 : index
    %c0_1 = arith.constant 0 : index
    %3 = vector.load %arg9[%c0, %c0_1] : memref<128x128xf32, #tpu.memory_space<vmem>>, vector<128x128xf32>
    %c0_2 = arith.constant 0 : index
    %c0_3 = arith.constant 0 : index
    %4 = vector.load %arg2[%c0_2, %c0_3] : memref<128x128xbf16, #tpu.memory_space<vmem>>, vector<128x128xbf16>
    %c0_4 = arith.constant 0 : index
    %c0_5 = arith.constant 0 : index
    %5 = vector.load %arg3[%c0_4, %c0_5] : memref<128x128xbf16, #tpu.memory_space<vmem>>, vector<128x128xbf16>
    %cst = arith.constant dense<0.000000e+00> : vector<128x128xf32>
    %6 = tpu.matmul %4, %5, %cst {dimension_numbers = #tpu.dot_dimension_numbers<[1], [0], [0], [1], [0, 0, 1, 1], [], []>} : vector<128x128xbf16>, vector<128x128xbf16>, vector<128x128xf32> -> vector<128x128xf32>
    %7 = arith.addf %3, %6 : vector<128x128xf32>
    %c0_6 = arith.constant 0 : index
    %c0_7 = arith.constant 0 : index
    %8 = vector.load %arg9[%c0_6, %c0_7] : memref<128x128xf32, #tpu.memory_space<vmem>>, vector<128x128xf32>
    tpu.vector_store %arg9[%c0_6, %c0_7], %7 {strides = array<i32>} : memref<128x128xf32, #tpu.memory_space<vmem>>, vector<128x128xf32>,
    %c0_i32_8 = arith.constant 0 : i32
    %9 = arith.cmpi eq, %arg1, %c0_i32_8 : i32
    %10 = arith.extui %9 : i1 to i32
    %c0_i32_9 = arith.constant 0 : i32
    %11 = arith.cmpi ne, %10, %c0_i32_9 : i32
    scf.if %11 {
      %c0_10 = arith.constant 0 : index
      %c0_11 = arith.constant 0 : index
      %12 = vector.load %arg9[%c0_10, %c0_11] : memref<128x128xf32, #tpu.memory_space<vmem>>, vector<128x128xf32>
      %13 = arith.truncf %12 : vector<128x128xf32> to vector<128x128xbf16>
      %c0_12 = arith.constant 0 : index
      %c0_13 = arith.constant 0 : index
      %14 = vector.load %arg5[%c0_12, %c0_13] : memref<128x128xbf16, #tpu.memory_space<vmem>>, vector<128x128xbf16>
      %cst_14 = arith.constant dense<0.000000e+00> : vector<128x128xf32>
      %15 = tpu.matmul %13, %14, %cst_14 {dimension_numbers = #tpu.dot_dimension_numbers<[1], [0], [0], [1], [0, 0, 1, 1], [], []>} : vector<128x128xbf16>, vector<128x128xbf16>, vector<128x128xf32> -> vector<128x128xf32>
      %c0_15 = arith.constant 0 : index
      %c0_16 = arith.constant 0 : index
      %16 = vector.load %arg4[%c0_15, %c0_16] : memref<128x128xbf16, #tpu.memory_space<vmem>>, vector<128x128xbf16>
      %c0_17 = arith.constant 0 : index
      %c0_18 = arith.constant 0 : index
      %17 = vector.load %arg6[%c0_17, %c0_18] : memref<128x128xbf16, #tpu.memory_space<vmem>>, vector<128x128xbf16>
      %cst_19 = arith.constant dense<0.000000e+00> : vector<128x128xf32>
      %18 = tpu.matmul %16, %17, %cst_19 {dimension_numbers = #tpu.dot_dimension_numbers<[1], [0], [0], [1], [0, 0, 1, 1], [], []>} : vector<128x128xbf16>, vector<128x128xbf16>, vector<128x128xf32> -> vector<128x128xf32>
      %19 = arith.addf %15, %18 : vector<128x128xf32>
      %c0_20 = arith.constant 0 : index
      %c0_21 = arith.constant 0 : index
      %20 = vector.load %arg7[%c0_20, %c0_21] : memref<1x128xf32, #tpu.memory_space<vmem>>, vector<1x128xf32>
      %21 = vector.broadcast %20 : vector<1x128xf32> to vector<128x128xf32>
      %22 = arith.addf %19, %21 : vector<128x128xf32>
      %cst_22 = arith.constant 0.000000e+00 : f32
      %23 = vector.broadcast %cst_22 : f32 to vector<128x128xf32>
      %24 = arith.maximumf %22, %23 : vector<128x128xf32>
      %c0_23 = arith.constant 0 : index
      %c0_24 = arith.constant 0 : index
      %25 = vector.load %arg8[%c0_23, %c0_24] : memref<128x128xf32, #tpu.memory_space<vmem>>, vector<128x128xf32>
      tpu.vector_store %arg8[%c0_23, %c0_24], %24 {strides = array<i32>} : memref<128x128xf32, #tpu.memory_space<vmem>>, vector<128x128xf32>,
    } else {
    }
    return
  }
  func.func @transform_0(%arg0: i32, %arg1: i32) -> (i32, i32) {
    %c0_i32 = arith.constant 0 : i32
    return %arg0, %arg1 : i32, i32
  }
  func.func @transform_1(%arg0: i32, %arg1: i32) -> (i32, i32) {
    %c0_i32 = arith.constant 0 : i32
    %c0_i32_0 = arith.constant 0 : i32
    return %arg1, %c0_i32 : i32, i32
  }
  func.func @transform_2(%arg0: i32, %arg1: i32) -> (i32, i32) {
    %c0_i32 = arith.constant 0 : i32
    %c0_i32_0 = arith.constant 0 : i32
    return %arg0, %c0_i32 : i32, i32
  }
  func.func @transform_3(%arg0: i32, %arg1: i32) -> (i32, i32) {
    %c0_i32 = arith.constant 0 : i32
    %c0_i32_0 = arith.constant 0 : i32
    %c0_i32_1 = arith.constant 0 : i32
    return %c0_i32, %c0_i32_0 : i32, i32
  }
  func.func @transform_4(%arg0: i32, %arg1: i32) -> (i32, i32) {
    %c0_i32 = arith.constant 0 : i32
    %c0_i32_0 = arith.constant 0 : i32
    %c0_i32_1 = arith.constant 0 : i32
    return %c0_i32, %c0_i32_0 : i32, i32
  }
  func.func @transform_5(%arg0: i32, %arg1: i32) -> (i32, i32) {
    %c0_i32 = arith.constant 0 : i32
    %c0_i32_0 = arith.constant 0 : i32
    %c0_i32_1 = arith.constant 0 : i32
    return %c0_i32, %c0_i32_0 : i32, i32
  }
  func.func @transform_6(%arg0: i32, %arg1: i32) -> (i32, i32) {
    %c0_i32 = arith.constant 0 : i32
    %c0_i32_0 = arith.constant 0 : i32
    return %arg0, %c0_i32 : i32, i32
  }
}

module attributes {stable_mosaic.version = 11 : i64} {
  func.func @_sage_layer_kernel(%arg0: i32, %arg1: i32, %arg2: memref<128x128xbf16, #tpu.memory_space<vmem>>, %arg3: memref<128x128xbf16, #tpu.memory_space<vmem>>, %arg4: memref<128x128xbf16, #tpu.memory_space<vmem>>, %arg5: memref<128x128xbf16, #tpu.memory_space<vmem>>, %arg6: memref<128x128xbf16, #tpu.memory_space<vmem>>, %arg7: memref<1x128xf32, #tpu.memory_space<vmem>>, %arg8: memref<128x128xf32, #tpu.memory_space<vmem>>, %arg9: memref<128x128xf32, #tpu.memory_space<vmem>>) attributes {dimension_semantics = [#tpu.dimension_semantics<parallel>, #tpu.dimension_semantics<arbitrary>], iteration_bounds = array<i64: 1, 1>, scalar_prefetch = 0 : i64, scratch_operands = 1 : i64, tpu.core_type = #tpu.core_type<tc>, window_params = [{transform_indices = @transform_0, window_bounds = array<i64: 128, 128>}, {transform_indices = @transform_1, window_bounds = array<i64: 128, 128>}, {transform_indices = @transform_2, window_bounds = array<i64: 128, 128>}, {pipeline_mode = #tpu.pipeline_mode<synchronous>, transform_indices = @transform_3, window_bounds = array<i64: 128, 128>}, {pipeline_mode = #tpu.pipeline_mode<synchronous>, transform_indices = @transform_4, window_bounds = array<i64: 128, 128>}, {pipeline_mode = #tpu.pipeline_mode<synchronous>, transform_indices = @transform_5, window_bounds = array<i64: 1, 128>}, {transform_indices = @transform_6, window_bounds = array<i64: 128, 128>}]} {
    %c0_i32 = arith.constant 0 : i32
    %0 = arith.cmpi eq, %arg1, %c0_i32 : i32
    %1 = arith.extui %0 : i1 to i32
    %c0_i32_0 = arith.constant 0 : i32
    %2 = arith.cmpi ne, %1, %c0_i32_0 : i32
    scf.if %2 {
      %cst_10 = arith.constant 0.000000e+00 : f32
      %12 = vector.broadcast %cst_10 : f32 to vector<128x128xf32>
      %c0_11 = arith.constant 0 : index
      %c0_12 = arith.constant 0 : index
      %13 = vector.load %arg9[%c0_11, %c0_12] : memref<128x128xf32, #tpu.memory_space<vmem>>, vector<128x128xf32>
      tpu.vector_store %arg9[%c0_11, %c0_12], %12 {strides = array<i32>} : memref<128x128xf32, #tpu.memory_space<vmem>>, vector<128x128xf32>,
    } else {
    }
    %c0 = arith.constant 0 : index
    %c0_1 = arith.constant 0 : index
    %3 = vector.load %arg9[%c0, %c0_1] : memref<128x128xf32, #tpu.memory_space<vmem>>, vector<128x128xf32>
    %c0_2 = arith.constant 0 : index
    %c0_3 = arith.constant 0 : index
    %4 = vector.load %arg2[%c0_2, %c0_3] : memref<128x128xbf16, #tpu.memory_space<vmem>>, vector<128x128xbf16>
    %c0_4 = arith.constant 0 : index
    %c0_5 = arith.constant 0 : index
    %5 = vector.load %arg3[%c0_4, %c0_5] : memref<128x128xbf16, #tpu.memory_space<vmem>>, vector<128x128xbf16>
    %cst = arith.constant dense<0.000000e+00> : vector<128x128xf32>
    %6 = tpu.matmul %4, %5, %cst {dimension_numbers = #tpu.dot_dimension_numbers<[1], [0], [0], [1], [0, 0, 1, 1], [], []>} : vector<128x128xbf16>, vector<128x128xbf16>, vector<128x128xf32> -> vector<128x128xf32>
    %7 = arith.addf %3, %6 : vector<128x128xf32>
    %c0_6 = arith.constant 0 : index
    %c0_7 = arith.constant 0 : index
    %8 = vector.load %arg9[%c0_6, %c0_7] : memref<128x128xf32, #tpu.memory_space<vmem>>, vector<128x128xf32>
    tpu.vector_store %arg9[%c0_6, %c0_7], %7 {strides = array<i32>} : memref<128x128xf32, #tpu.memory_space<vmem>>, vector<128x128xf32>,
    %c0_i32_8 = arith.constant 0 : i32
    %9 = arith.cmpi eq, %arg1, %c0_i32_8 : i32
    %10 = arith.extui %9 : i1 to i32
    %c0_i32_9 = arith.constant 0 : i32
    %11 = arith.cmpi ne, %10, %c0_i32_9 : i32
    scf.if %11 {
      %c0_10 = arith.constant 0 : index
      %c0_11 = arith.constant 0 : index
      %12 = vector.load %arg9[%c0_10, %c0_11] : memref<128x128xf32, #tpu.memory_space<vmem>>, vector<128x128xf32>
      %13 = arith.truncf %12 : vector<128x128xf32> to vector<128x128xbf16>
      %c0_12 = arith.constant 0 : index
      %c0_13 = arith.constant 0 : index
      %14 = vector.load %arg5[%c0_12, %c0_13] : memref<128x128xbf16, #tpu.memory_space<vmem>>, vector<128x128xbf16>
      %cst_14 = arith.constant dense<0.000000e+00> : vector<128x128xf32>
      %15 = tpu.matmul %13, %14, %cst_14 {dimension_numbers = #tpu.dot_dimension_numbers<[1], [0], [0], [1], [0, 0, 1, 1], [], []>} : vector<128x128xbf16>, vector<128x128xbf16>, vector<128x128xf32> -> vector<128x128xf32>
      %c0_15 = arith.constant 0 : index
      %c0_16 = arith.constant 0 : index
      %16 = vector.load %arg4[%c0_15, %c0_16] : memref<128x128xbf16, #tpu.memory_space<vmem>>, vector<128x128xbf16>
      %c0_17 = arith.constant 0 : index
      %c0_18 = arith.constant 0 : index
      %17 = vector.load %arg6[%c0_17, %c0_18] : memref<128x128xbf16, #tpu.memory_space<vmem>>, vector<128x128xbf16>
      %cst_19 = arith.constant dense<0.000000e+00> : vector<128x128xf32>
      %18 = tpu.matmul %16, %17, %cst_19 {dimension_numbers = #tpu.dot_dimension_numbers<[1], [0], [0], [1], [0, 0, 1, 1], [], []>} : vector<128x128xbf16>, vector<128x128xbf16>, vector<128x128xf32> -> vector<128x128xf32>
      %19 = arith.addf %15, %18 : vector<128x128xf32>
      %c0_20 = arith.constant 0 : index
      %c0_21 = arith.constant 0 : index
      %20 = vector.load %arg7[%c0_20, %c0_21] : memref<1x128xf32, #tpu.memory_space<vmem>>, vector<1x128xf32>
      %21 = vector.broadcast %20 : vector<1x128xf32> to vector<128x128xf32>
      %22 = arith.addf %19, %21 : vector<128x128xf32>
      %c0_22 = arith.constant 0 : index
      %c0_23 = arith.constant 0 : index
      %23 = vector.load %arg8[%c0_22, %c0_23] : memref<128x128xf32, #tpu.memory_space<vmem>>, vector<128x128xf32>
      tpu.vector_store %arg8[%c0_22, %c0_23], %22 {strides = array<i32>} : memref<128x128xf32, #tpu.memory_space<vmem>>, vector<128x128xf32>,
    } else {
    }
    return
  }
  func.func @transform_0(%arg0: i32, %arg1: i32) -> (i32, i32) {
    %c0_i32 = arith.constant 0 : i32
    return %arg0, %arg1 : i32, i32
  }
  func.func @transform_1(%arg0: i32, %arg1: i32) -> (i32, i32) {
    %c0_i32 = arith.constant 0 : i32
    %c0_i32_0 = arith.constant 0 : i32
    return %arg1, %c0_i32 : i32, i32
  }
  func.func @transform_2(%arg0: i32, %arg1: i32) -> (i32, i32) {
    %c0_i32 = arith.constant 0 : i32
    %c0_i32_0 = arith.constant 0 : i32
    return %arg0, %c0_i32 : i32, i32
  }
  func.func @transform_3(%arg0: i32, %arg1: i32) -> (i32, i32) {
    %c0_i32 = arith.constant 0 : i32
    %c0_i32_0 = arith.constant 0 : i32
    %c0_i32_1 = arith.constant 0 : i32
    return %c0_i32, %c0_i32_0 : i32, i32
  }
  func.func @transform_4(%arg0: i32, %arg1: i32) -> (i32, i32) {
    %c0_i32 = arith.constant 0 : i32
    %c0_i32_0 = arith.constant 0 : i32
    %c0_i32_1 = arith.constant 0 : i32
    return %c0_i32, %c0_i32_0 : i32, i32
  }
  func.func @transform_5(%arg0: i32, %arg1: i32) -> (i32, i32) {
    %c0_i32 = arith.constant 0 : i32
    %c0_i32_0 = arith.constant 0 : i32
    %c0_i32_1 = arith.constant 0 : i32
    return %c0_i32, %c0_i32_0 : i32, i32
  }
  func.func @transform_6(%arg0: i32, %arg1: i32) -> (i32, i32) {
    %c0_i32 = arith.constant 0 : i32
    %c0_i32_0 = arith.constant 0 : i32
    return %arg0, %c0_i32 : i32, i32
  }
}

module attributes {stable_mosaic.version = 11 : i64} {
  func.func @_decoder_kernel(%arg0: i32, %arg1: memref<16x128xbf16, #tpu.memory_space<vmem>>, %arg2: memref<16x128xbf16, #tpu.memory_space<vmem>>, %arg3: memref<128x128xbf16, #tpu.memory_space<vmem>>, %arg4: memref<128x128xbf16, #tpu.memory_space<vmem>>, %arg5: memref<1x128xf32, #tpu.memory_space<vmem>>, %arg6: memref<128x128xbf16, #tpu.memory_space<vmem>>, %arg7: memref<1x128xf32, #tpu.memory_space<vmem>>, %arg8: memref<16x128xf32, #tpu.memory_space<vmem>>) attributes {dimension_semantics = [#tpu.dimension_semantics<parallel>], iteration_bounds = array<i64: 1>, scalar_prefetch = 0 : i64, scratch_operands = 0 : i64, tpu.core_type = #tpu.core_type<tc>, window_params = [{transform_indices = @transform_0, window_bounds = array<i64: 16, 128>}, {transform_indices = @transform_1, window_bounds = array<i64: 16, 128>}, {pipeline_mode = #tpu.pipeline_mode<synchronous>, transform_indices = @transform_2, window_bounds = array<i64: 128, 128>}, {pipeline_mode = #tpu.pipeline_mode<synchronous>, transform_indices = @transform_3, window_bounds = array<i64: 128, 128>}, {pipeline_mode = #tpu.pipeline_mode<synchronous>, transform_indices = @transform_4, window_bounds = array<i64: 1, 128>}, {pipeline_mode = #tpu.pipeline_mode<synchronous>, transform_indices = @transform_5, window_bounds = array<i64: 128, 128>}, {pipeline_mode = #tpu.pipeline_mode<synchronous>, transform_indices = @transform_6, window_bounds = array<i64: 1, 128>}, {transform_indices = @transform_7, window_bounds = array<i64: 16, 128>}]} {
    %c0 = arith.constant 0 : index
    %c0_0 = arith.constant 0 : index
    %0 = vector.load %arg1[%c0, %c0_0] : memref<16x128xbf16, #tpu.memory_space<vmem>>, vector<16x128xbf16>
    %c0_1 = arith.constant 0 : index
    %c0_2 = arith.constant 0 : index
    %1 = vector.load %arg3[%c0_1, %c0_2] : memref<128x128xbf16, #tpu.memory_space<vmem>>, vector<128x128xbf16>
    %cst = arith.constant dense<0.000000e+00> : vector<16x128xf32>
    %2 = tpu.matmul %0, %1, %cst {dimension_numbers = #tpu.dot_dimension_numbers<[1], [0], [0], [1], [0, 0, 1, 1], [], []>} : vector<16x128xbf16>, vector<128x128xbf16>, vector<16x128xf32> -> vector<16x128xf32>
    %c0_3 = arith.constant 0 : index
    %c0_4 = arith.constant 0 : index
    %3 = vector.load %arg2[%c0_3, %c0_4] : memref<16x128xbf16, #tpu.memory_space<vmem>>, vector<16x128xbf16>
    %c0_5 = arith.constant 0 : index
    %c0_6 = arith.constant 0 : index
    %4 = vector.load %arg4[%c0_5, %c0_6] : memref<128x128xbf16, #tpu.memory_space<vmem>>, vector<128x128xbf16>
    %cst_7 = arith.constant dense<0.000000e+00> : vector<16x128xf32>
    %5 = tpu.matmul %3, %4, %cst_7 {dimension_numbers = #tpu.dot_dimension_numbers<[1], [0], [0], [1], [0, 0, 1, 1], [], []>} : vector<16x128xbf16>, vector<128x128xbf16>, vector<16x128xf32> -> vector<16x128xf32>
    %6 = arith.addf %2, %5 : vector<16x128xf32>
    %c0_8 = arith.constant 0 : index
    %c0_9 = arith.constant 0 : index
    %7 = vector.load %arg5[%c0_8, %c0_9] : memref<1x128xf32, #tpu.memory_space<vmem>>, vector<1x128xf32>
    %8 = vector.broadcast %7 : vector<1x128xf32> to vector<16x128xf32>
    %9 = arith.addf %6, %8 : vector<16x128xf32>
    %cst_10 = arith.constant 0.000000e+00 : f32
    %10 = vector.broadcast %cst_10 : f32 to vector<16x128xf32>
    %11 = arith.maximumf %9, %10 : vector<16x128xf32>
    %12 = arith.truncf %11 : vector<16x128xf32> to vector<16x128xbf16>
    %c0_11 = arith.constant 0 : index
    %c0_12 = arith.constant 0 : index
    %13 = vector.load %arg6[%c0_11, %c0_12] : memref<128x128xbf16, #tpu.memory_space<vmem>>, vector<128x128xbf16>
    %cst_13 = arith.constant dense<0.000000e+00> : vector<16x128xf32>
    %14 = tpu.matmul %12, %13, %cst_13 {dimension_numbers = #tpu.dot_dimension_numbers<[1], [0], [0], [1], [0, 0, 1, 1], [], []>} : vector<16x128xbf16>, vector<128x128xbf16>, vector<16x128xf32> -> vector<16x128xf32>
    %c0_14 = arith.constant 0 : index
    %c0_15 = arith.constant 0 : index
    %15 = vector.load %arg7[%c0_14, %c0_15] : memref<1x128xf32, #tpu.memory_space<vmem>>, vector<1x128xf32>
    %16 = vector.broadcast %15 : vector<1x128xf32> to vector<16x128xf32>
    %17 = arith.addf %14, %16 : vector<16x128xf32>
    %c0_16 = arith.constant 0 : index
    %c0_17 = arith.constant 0 : index
    %18 = vector.load %arg8[%c0_16, %c0_17] : memref<16x128xf32, #tpu.memory_space<vmem>>, vector<16x128xf32>
    tpu.vector_store %arg8[%c0_16, %c0_17], %17 {strides = array<i32>} : memref<16x128xf32, #tpu.memory_space<vmem>>, vector<16x128xf32>,
    return
  }
  func.func @transform_0(%arg0: i32) -> (i32, i32) {
    %c0_i32 = arith.constant 0 : i32
    %c0_i32_0 = arith.constant 0 : i32
    return %arg0, %c0_i32 : i32, i32
  }
  func.func @transform_1(%arg0: i32) -> (i32, i32) {
    %c0_i32 = arith.constant 0 : i32
    %c0_i32_0 = arith.constant 0 : i32
    return %arg0, %c0_i32 : i32, i32
  }
  func.func @transform_2(%arg0: i32) -> (i32, i32) {
    %c0_i32 = arith.constant 0 : i32
    %c0_i32_0 = arith.constant 0 : i32
    %c0_i32_1 = arith.constant 0 : i32
    return %c0_i32, %c0_i32_0 : i32, i32
  }
  func.func @transform_3(%arg0: i32) -> (i32, i32) {
    %c0_i32 = arith.constant 0 : i32
    %c0_i32_0 = arith.constant 0 : i32
    %c0_i32_1 = arith.constant 0 : i32
    return %c0_i32, %c0_i32_0 : i32, i32
  }
  func.func @transform_4(%arg0: i32) -> (i32, i32) {
    %c0_i32 = arith.constant 0 : i32
    %c0_i32_0 = arith.constant 0 : i32
    %c0_i32_1 = arith.constant 0 : i32
    return %c0_i32, %c0_i32_0 : i32, i32
  }
  func.func @transform_5(%arg0: i32) -> (i32, i32) {
    %c0_i32 = arith.constant 0 : i32
    %c0_i32_0 = arith.constant 0 : i32
    %c0_i32_1 = arith.constant 0 : i32
    return %c0_i32, %c0_i32_0 : i32, i32
  }
  func.func @transform_6(%arg0: i32) -> (i32, i32) {
    %c0_i32 = arith.constant 0 : i32
    %c0_i32_0 = arith.constant 0 : i32
    %c0_i32_1 = arith.constant 0 : i32
    return %c0_i32, %c0_i32_0 : i32, i32
  }
  func.func @transform_7(%arg0: i32) -> (i32, i32) {
    %c0_i32 = arith.constant 0 : i32
    %c0_i32_0 = arith.constant 0 : i32
    return %arg0, %c0_i32 : i32, i32
  }
}

</mosaic_0001>

<bundles_post_ra>
// kernel: simple_graphsage_forward.4
= control target key start
LH: loop header
LB: loop body
LE: loop exit
PB: predicated region body
PF: predicated region fallthrough
CT: control target
= control target key end

     0   :  { %s1270_s1 = inlined_call_operand.vmem [shape: bf16[128,128], index: 1, kind: input, shape index: {}, may-alias: {1,2}]   ;;  %s1271_s0 = inlined_call_operand.vmem [shape: bf16[128,128], index: 0, kind: input, shape index: {}]   ;;  %s1272_s4 = inlined_call_operand.vmem [shape: bf16[128,128], index: 4, kind: input, shape index: {}]   ;;  %s1273_s3 = inlined_call_operand.vmem [shape: bf16[128,128], index: 3, kind: input, shape index: {}]   ;;  %s1274_s2 = inlined_call_operand.vmem [shape: bf16[128,128], index: 2, kind: input, shape index: {}, may-alias: {1,2}]   ;;  %s1275_s5 = inlined_call_operand.vmem [shape: f32[1,128], index: 5, kind: input, shape index: {}]   ;;  %s1276_s6 = inlined_call_operand.vmem [shape: f32[128,128], index: 6, kind: output, shape index: {}]  }
   0x1   :  { %v1006_v0 = vld [vmem:[%s1270_s1] sm:$0xff]   ;;  %v1007_v1 = vld [vmem:[%s1270_s1 + $0x8] sm:$0xff]   ;;  %v1008_v2 = vld [vmem:[%s1270_s1 + $0x10] sm:$0xff]  }
   0x2   :  { %878 = vmatprep.subr.bf16.mxu0 %v1006_v0  ;;  %v1009_v3 = vld [vmem:[%s1270_s1 + $0x18] sm:$0xff]   ;;  %v1014_v4 = vld [vmem:[%s1271_s0] sm:$0xff]   ;;  %v1011_v6 = vld [vmem:[%s1270_s1 + $0x28] sm:$0xff]  }
   0x3   :  { %879 = vmatpush3.bf16.msra.mxu0 %v1006_v0  ;;  %894 = vmatprep.mubr.bf16.mxu0 %v1014_v4  ;;  %v1010_v5 = vld [vmem:[%s1270_s1 + $0x20] sm:$0xff]   ;;  %v1023_v8 = vld [vmem:[%s1272_s4 + $0x8] sm:$0xff]   ;;  %v1012_v9 = vld [vmem:[%s1270_s1 + $0x30] sm:$0xff]  }
   0x4   :  { %880 = vmatprep.subr.bf16.mxu0 %v1007_v1  ;;  %v1022_v7 = vld [vmem:[%s1272_s4] sm:$0xff]   ;;  %v1024_v10 = vld [vmem:[%s1272_s4 + $0x10] sm:$0xff]   ;;  %v1013_v11 = vld [vmem:[%s1270_s1 + $0x38] sm:$0xff]  }
   0x5   :  { %910 = vmatprep.subr.bf16.mxu1 %v1022_v7  ;;  %v1025_v12 = vld [vmem:[%s1272_s4 + $0x18] sm:$0xff]   ;;  %v1026_v13 = vld [vmem:[%s1272_s4 + $0x20] sm:$0xff]   ;;  %v1015_v16 = vld [vmem:[%s1271_s0 + $0x8] sm:$0xff]  }
   0x6   :  { %911 = vmatpush3.bf16.msra.mxu1 %v1022_v7  ;;  %v1033_v14 = vld [vmem:[%s1274_s2] sm:$0xff]   ;;  %v1016_v17 = vld [vmem:[%s1271_s0 + $0x10] sm:$0xff]   ;;  %v1028_v18 = vld [vmem:[%s1272_s4 + $0x28] sm:$0xff]  }
   0x7   :  { %881 = vmatpush3.bf16.msra.mxu0 %v1007_v1  ;;  %912 = vmatprep.subr.bf16.mxu1 %v1023_v8  ;;  %v1027_v15 = vld [vmem:[%s1273_s3] sm:$0xff]   ;;  %v1029_v19 = vld [vmem:[%s1273_s3 + $0x8] sm:$0xff]   ;;  %v1030_v20 = vld [vmem:[%s1272_s4 + $0x30] sm:$0xff]  }
   0x8   :  { %882 = vmatprep.subr.bf16.mxu0 %v1008_v2  ;;  %926 = vmatprep.mubr.bf16.mxu1 %v1033_v14  ;;  %v1031_v21 = vld [vmem:[%s1273_s3 + $0x10] sm:$0xff]   ;;  %v1017_v22 = vld [vmem:[%s1271_s0 + $0x18] sm:$0xff]   ;;  %v1018_v23 = vld [vmem:[%s1271_s0 + $0x20] sm:$0xff]  }
   0x9   :  { %v1032_v24 = vld [vmem:[%s1272_s4 + $0x38] sm:$0xff]   ;;  %v1036_v26 = vld [vmem:[%s1273_s3 + $0x20] sm:$0xff]   ;;  %v1019_v27 = vld [vmem:[%s1271_s0 + $0x28] sm:$0xff]  }
   0xa   :  { %913 = vmatpush3.bf16.msra.mxu1 %v1023_v8  ;;  %v1034_v25 = vld [vmem:[%s1273_s3 + $0x18] sm:$0xff]   ;;  %v1035_v28 = vld [vmem:[%s1274_s2 + $0x8] sm:$0xff]   ;;  %v1020_v29 = vld [vmem:[%s1271_s0 + $0x30] sm:$0xff]  }
   0xb   :  { %883 = vmatpush3.bf16.msra.mxu0 %v1008_v2  ;;  %914 = vmatprep.subr.bf16.mxu1 %v1024_v10  ;;  %v1037_v30 = vld [vmem:[%s1274_s2 + $0x10] sm:$0xff]   ;;  %v1038_v31 = vld [vmem:[%s1273_s3 + $0x28] sm:$0xff]   ;;  %v1021_v33 = vld [vmem:[%s1271_s0 + $0x38] sm:$0xff]  }
   0xc   :  { %884 = vmatprep.subr.bf16.mxu0 %v1009_v3  ;;  %v1040_v32 = vld [vmem:[%s1273_s3 + $0x30] sm:$0xff]   ;;  %v1039_v34 = vld [vmem:[%s1274_s2 + $0x18] sm:$0xff]   ;;  %v1042_v36 = vld [vmem:[%s1274_s2 + $0x20] sm:$0xff]  }
   0xd   :  { %v1041_v35 = vld [vmem:[%s1273_s3 + $0x38] sm:$0xff]   ;;  %v1043_v37 = vld [vmem:[%s1274_s2 + $0x28] sm:$0xff]   ;;  %v1044_v38 = vld [vmem:[%s1274_s2 + $0x30] sm:$0xff]  }
   0xe   :  { %915 = vmatpush3.bf16.msra.mxu1 %v1024_v10  ;;  %v1045_v39 = vld [vmem:[%s1274_s2 + $0x38] sm:$0xff]  }
   0xf   :  { %885 = vmatpush3.bf16.msra.mxu0 %v1009_v3  ;;  %916 = vmatprep.subr.bf16.mxu1 %v1025_v12 }
  0x10   :  { %886 = vmatprep.subr.bf16.mxu0 %v1010_v5 }
  0x12   :  { %917 = vmatpush3.bf16.msra.mxu1 %v1025_v12 }
  0x13   :  { %887 = vmatpush3.bf16.msra.mxu0 %v1010_v5  ;;  %918 = vmatprep.subr.bf16.mxu1 %v1026_v13 }
  0x14   :  { %888 = vmatprep.subr.bf16.mxu0 %v1011_v6 }
  0x16   :  { %919 = vmatpush3.bf16.msra.mxu1 %v1026_v13 }
  0x17   :  { %889 = vmatpush3.bf16.msra.mxu0 %v1011_v6  ;;  %920 = vmatprep.subr.bf16.mxu1 %v1028_v18 }
  0x18   :  { %890 = vmatprep.subr.bf16.mxu0 %v1012_v9 }
  0x1a   :  { %921 = vmatpush3.bf16.msra.mxu1 %v1028_v18 }
  0x1b   :  { %891 = vmatpush3.bf16.msra.mxu0 %v1012_v9  ;;  %922 = vmatprep.subr.bf16.mxu1 %v1030_v20  ;;  %v1204_v9 = vld [vmem:[%s1275_s5] ss:$0 sm:$0xff] }
  0x1c   :  { %892 = vmatprep.subr.bf16.mxu0 %v1013_v11 }
  0x1e   :  { %923 = vmatpush3.bf16.msra.mxu1 %v1030_v20 }
  0x1f   :  { %893 = vmatpush3.bf16.msra.mxu0 %v1013_v11  ;;  %924 = vmatprep.subr.bf16.mxu1 %v1032_v24 }
  0x20   :  { %942 = vmatprep.subr.bf16.mxu0 %v1027_v15 }
  0x22   :  { %895 = vmatmul.mubr.bf16.vlgmr.msra.gmra.mrb[0].mxu0 %v1015_v16  ;;  %925 = vmatpush3.bf16.msra.mxu1 %v1032_v24 }
  0x23   :  { %898 = vmatprep.mubr.bf16.mxu0 %v1016_v17  ;;  %943 = vmatpush3.bf16.msra.mxu0 %v1027_v15 }
  0x24   :  { %944 = vmatprep.subr.bf16.mxu0 %v1029_v19  ;;  %974 = vmatprep.subr.bf16.mxu1 %v1027_v15 }
  0x25   :  { %927 = vmatmul.mubr.bf16.vlgmr.msra.gmra.mrb[0].mxu1 %v1035_v28 }
  0x26   :  { %982 = vmatpush3.bf16.msra.mxu1 %v1027_v15  ;;  %930 = vmatprep.mubr.bf16.mxu1 %v1037_v30 }
  0x27   :  { %945 = vmatpush3.bf16.msra.mxu0 %v1029_v19  ;;  %975 = vmatprep.subr.bf16.mxu1 %v1029_v19 }
  0x28   :  { %946 = vmatprep.subr.bf16.mxu0 %v1031_v21 }
  0x2a   :  { %899 = vmatmul.mubr.bf16.gmra.mrb[4].mxu0 %v1017_v22  ;;  %983 = vmatpush3.bf16.msra.mxu1 %v1029_v19 }
  0x2b   :  { %902 = vmatprep.mubr.bf16.mxu0 %v1018_v23  ;;  %947 = vmatpush3.bf16.msra.mxu0 %v1031_v21 }
  0x2c   :  { %948 = vmatprep.subr.bf16.mxu0 %v1034_v25  ;;  %976 = vmatprep.subr.bf16.mxu1 %v1031_v21 }
  0x2d   :  { %931 = vmatmul.mubr.bf16.gmra.mrb[4].mxu1 %v1039_v34 }
  0x2e   :  { %984 = vmatpush3.bf16.msra.mxu1 %v1031_v21  ;;  %934 = vmatprep.mubr.bf16.mxu1 %v1042_v36 }
  0x2f   :  { %949 = vmatpush3.bf16.msra.mxu0 %v1034_v25  ;;  %977 = vmatprep.subr.bf16.mxu1 %v1034_v25 }
  0x30   :  { %950 = vmatprep.subr.bf16.mxu0 %v1036_v26 }
  0x32   :  { %903 = vmatmul.mubr.bf16.gmra.mrb[8].mxu0 %v1019_v27  ;;  %985 = vmatpush3.bf16.msra.mxu1 %v1034_v25 }
  0x33   :  { %906 = vmatprep.mubr.bf16.mxu0 %v1020_v29  ;;  %951 = vmatpush3.bf16.msra.mxu0 %v1036_v26 }
  0x34   :  { %952 = vmatprep.subr.bf16.mxu0 %v1038_v31  ;;  %978 = vmatprep.subr.bf16.mxu1 %v1036_v26 }
  0x35   :  { %935 = vmatmul.mubr.bf16.gmra.mrb[8].mxu1 %v1043_v37 }
  0x36   :  { %986 = vmatpush3.bf16.msra.mxu1 %v1036_v26  ;;  %938 = vmatprep.mubr.bf16.mxu1 %v1044_v38 }
  0x37   :  { %953 = vmatpush3.bf16.msra.mxu0 %v1038_v31  ;;  %979 = vmatprep.subr.bf16.mxu1 %v1038_v31 }
  0x38   :  { %954 = vmatprep.subr.bf16.mxu0 %v1040_v32 }
  0x3a   :  { %907 = vmatmul.mubr.bf16.gmra.mrb[12].mxu0 %v1021_v33  ;;  %987 = vmatpush3.bf16.msra.mxu1 %v1038_v31 }
  0x3b   :  { %955 = vmatpush3.bf16.msra.mxu0 %v1040_v32  ;;  %980 = vmatprep.subr.bf16.mxu1 %v1040_v32 }
  0x3c   :  { %956 = vmatprep.subr.bf16.mxu0 %v1041_v35 }
  0x3d   :  { %939 = vmatmul.mubr.bf16.gmra.mrb[12].mxu1 %v1045_v39 }
  0x3e   :  { %988 = vmatpush3.bf16.msra.mxu1 %v1040_v32 }
  0x3f   :  { %981 = vmatprep.subr.bf16.mxu1 %v1041_v35  ;;  %957 = vmatpush3.bf16.msra.mxu0 %v1041_v35 }
  0x42   :  { %989 = vmatpush3.bf16.msra.mxu1 %v1041_v35 }
  0xf5   :  { %v896_v40 = vpop.f32.mrb[0].mxu0 }
  0xf6   :  { %v222_v41 = vpop.f32.mrb[1].mxu0 }
  0xf7   :  { %v897_v42 = vpop.f32.mrb[2].mxu0 }
  0xf8   :  { %v337_v43 = vpack.c.bf16 %v897_v42, %v896_v40  ;;  %v225_v44 = vpop.f32.mrb[3].mxu0  ;;  %v928_v53 = vpop.f32.mrb[0].mxu1 }
  0xf9   :  { %v336_v45 = vpack.c.bf16 %v225_v44, %v222_v41  ;;  %v522_v55 = vpop.f32.mrb[1].mxu1 }
  0xfa   :  { %v929_v57 = vpop.f32.mrb[2].mxu1 }
  0xfb   :  { %958 = vmatprep.mubr.bf16.mxu0 %v336_v45  ;;  %v525_v60 = vpop.f32.mrb[3].mxu1 }
  0xfc   :  { %959 = vmatmul.mubr.bf16.vlgmr.msra.gmra.mrb[16].mxu0 %v337_v43 }
  0xfd   :  { %v900_v46 = vpop.f32.mrb[4].mxu0 }
  0xfe   :  { %v238_v47 = vpop.f32.mrb[5].mxu0 }
  0xff   :  { %v901_v48 = vpop.f32.mrb[6].mxu0 }
 0x100   :  { %v339_v49 = vpack.c.bf16 %v901_v48, %v900_v46  ;;  %v241_v50 = vpop.f32.mrb[7].mxu0  ;;  %v932_v63 = vpop.f32.mrb[4].mxu1 }
 0x101   :  { %v338_v51 = vpack.c.bf16 %v241_v50, %v238_v47  ;;  %v538_v1 = vpop.f32.mrb[5].mxu1 }
 0x102   :  { %v933_v3 = vpop.f32.mrb[6].mxu1 }
 0x103   :  { %962 = vmatprep.mubr.bf16.mxu0 %v338_v51  ;;  %v541_v6 = vpop.f32.mrb[7].mxu1 }
 0x104   :  { %963 = vmatmul.mubr.bf16.gmra.mrb[20].mxu0 %v339_v49 }
 0x105   :  { %v904_v52 = vpop.f32.mrb[8].mxu0 }
 0x106   :  { %v254_v54 = vpop.f32.mrb[9].mxu0 }
 0x107   :  { %v905_v56 = vpop.f32.mrb[10].mxu0 }
 0x108   :  { %v341_v58 = vpack.c.bf16 %v905_v56, %v904_v52  ;;  %v257_v59 = vpop.f32.mrb[11].mxu0 }
 0x109   :  { %v340_v61 = vpack.c.bf16 %v257_v59, %v254_v54 }
 0x10b   :  { %966 = vmatprep.mubr.bf16.mxu1 %v340_v61 }
 0x10c   :  { %967 = vmatmul.mubr.bf16.vlgmr.msra.gmra.mrb[8].mxu1 %v341_v58 }
 0x10d   :  { %v908_v62 = vpop.f32.mrb[12].mxu0 }
 0x10e   :  { %v270_v0 = vpop.f32.mrb[13].mxu0 }
 0x10f   :  { %v909_v2 = vpop.f32.mrb[14].mxu0 }
 0x110   :  { %v343_v4 = vpack.c.bf16 %v909_v2, %v908_v62  ;;  %v273_v5 = vpop.f32.mrb[15].mxu0 }
 0x111   :  { %v342_v7 = vpack.c.bf16 %v273_v5, %v270_v0 }
 0x113   :  { %970 = vmatprep.mubr.bf16.mxu1 %v342_v7 }
 0x114   :  { %971 = vmatmul.mubr.bf16.gmra.mrb[12].mxu1 %v343_v4 }
 0x1cf   :  { %v960_v8 = vpop.f32.mrb[16].mxu0 }
 0x1d0   :  { %v676_v10 = vadd.f32 %v960_v8, %v928_v53  ;;  %v667_v11 = vpop.f32.mrb[17].mxu0 }
 0x1d1   :  { %v668_v12 = vadd.f32 %v667_v11, %v522_v55  ;;  %v961_v13 = vpop.f32.mrb[18].mxu0 }
 0x1d2   :  { %v739_v14 = vadd.f32 %v1204_v9, %v676_v10  ;;  %v679_v15 = vadd.f32 %v961_v13, %v929_v57  ;;  %v670_v16 = vpop.f32.mrb[19].mxu0 }
 0x1d3   :  { %v737_v17 = vadd.f32 %v1204_v9, %v668_v12  ;;  %v671_v18 = vadd.f32 %v670_v16, %v525_v60 }
 0x1d4   :  { %v755_v19 = vmax.f32 %v739_v14, 0.0  ;;  %v740_v20 = vadd.f32 %v1204_v9, %v679_v15 }
 0x1d5   :  { %v753_v21 = vmax.f32 %v737_v17, 0.0  ;;  %v738_v22 = vadd.f32 %v1204_v9, %v671_v18 }
 0x1d6   :  { %771 = vst [vmem:[%s1276_s6 + $0x10] sm:$0xff] %v755_v19  ;;  %v756_v23 = vmax.f32 %v740_v20, 0.0 }
 0x1d7   :  { %769 = vst [vmem:[%s1276_s6] sm:$0xff] %v753_v21  ;;  %v754_v24 = vmax.f32 %v738_v22, 0.0  ;;  %v964_v25 = vpop.f32.mrb[20].mxu0 }
 0x1d8   :  { %772 = vst [vmem:[%s1276_s6 + $0x18] sm:$0xff] %v756_v23  ;;  %v692_v26 = vadd.f32 %v964_v25, %v932_v63  ;;  %v683_v27 = vpop.f32.mrb[21].mxu0 }
 0x1d9   :  { %770 = vst [vmem:[%s1276_s6 + $0x8] sm:$0xff] %v754_v24  ;;  %v684_v28 = vadd.f32 %v683_v27, %v538_v1  ;;  %v965_v29 = vpop.f32.mrb[22].mxu0 }
 0x1da   :  { %v743_v30 = vadd.f32 %v1204_v9, %v692_v26  ;;  %v695_v31 = vadd.f32 %v965_v29, %v933_v3  ;;  %v686_v32 = vpop.f32.mrb[23].mxu0 }
 0x1db   :  { %v741_v33 = vadd.f32 %v1204_v9, %v684_v28  ;;  %v687_v34 = vadd.f32 %v686_v32, %v541_v6 }
 0x1dc   :  { %v759_v35 = vmax.f32 %v743_v30, 0.0  ;;  %v744_v36 = vadd.f32 %v1204_v9, %v695_v31 }
 0x1dd   :  { %v757_v37 = vmax.f32 %v741_v33, 0.0  ;;  %v742_v38 = vadd.f32 %v1204_v9, %v687_v34 }
 0x1de   :  { %775 = vst [vmem:[%s1276_s6 + $0x30] sm:$0xff] %v759_v35  ;;  %v760_v39 = vmax.f32 %v744_v36, 0.0 }
 0x1df   :  { %773 = vst [vmem:[%s1276_s6 + $0x20] sm:$0xff] %v757_v37  ;;  %v758_v40 = vmax.f32 %v742_v38, 0.0  ;;  %v968_v41 = vpop.f32.mrb[8].mxu1 }
 0x1e0   :  { %776 = vst [vmem:[%s1276_s6 + $0x38] sm:$0xff] %v760_v39  ;;  %v747_v42 = vadd.f32 %v968_v41, %v1204_v9  ;;  %v699_v43 = vpop.f32.mrb[9].mxu1 }
 0x1e1   :  { %774 = vst [vmem:[%s1276_s6 + $0x28] sm:$0xff] %v758_v40  ;;  %v745_v44 = vadd.f32 %v1204_v9, %v699_v43  ;;  %v969_v45 = vpop.f32.mrb[10].mxu1 }
 0x1e2   :  { %v763_v46 = vmax.f32 %v747_v42, 0.0  ;;  %v748_v47 = vadd.f32 %v969_v45, %v1204_v9  ;;  %v702_v48 = vpop.f32.mrb[11].mxu1 }
 0x1e3   :  { %v761_v49 = vmax.f32 %v745_v44, 0.0  ;;  %v746_v50 = vadd.f32 %v1204_v9, %v702_v48 }
 0x1e4   :  { %779 = vst [vmem:[%s1276_s6 + $0x50] sm:$0xff] %v763_v46  ;;  %v764_v51 = vmax.f32 %v748_v47, 0.0 }
 0x1e5   :  { %777 = vst [vmem:[%s1276_s6 + $0x40] sm:$0xff] %v761_v49  ;;  %v762_v52 = vmax.f32 %v746_v50, 0.0 }
 0x1e6   :  { %780 = vst [vmem:[%s1276_s6 + $0x58] sm:$0xff] %v764_v51 }
 0x1e7   :  { %778 = vst [vmem:[%s1276_s6 + $0x48] sm:$0xff] %v762_v52  ;;  %v972_v53 = vpop.f32.mrb[12].mxu1 }
 0x1e8   :  { %v751_v54 = vadd.f32 %v972_v53, %v1204_v9  ;;  %v715_v55 = vpop.f32.mrb[13].mxu1 }
 0x1e9   :  { %v749_v56 = vadd.f32 %v1204_v9, %v715_v55  ;;  %v973_v57 = vpop.f32.mrb[14].mxu1 }
 0x1ea   :  { %v767_v58 = vmax.f32 %v751_v54, 0.0  ;;  %v752_v59 = vadd.f32 %v973_v57, %v1204_v9  ;;  %v718_v60 = vpop.f32.mrb[15].mxu1 }
 0x1eb   :  { %v765_v61 = vmax.f32 %v749_v56, 0.0  ;;  %v750_v62 = vadd.f32 %v1204_v9, %v718_v60 }
 0x1ec   :  { %783 = vst [vmem:[%s1276_s6 + $0x70] sm:$0xff] %v767_v58  ;;  %v768_v63 = vmax.f32 %v752_v59, 0.0 }
 0x1ed   :  { %781 = vst [vmem:[%s1276_s6 + $0x60] sm:$0xff] %v765_v61  ;;  %v766_v0 = vmax.f32 %v750_v62, 0.0 }
 0x1ee   :  { %784 = vst [vmem:[%s1276_s6 + $0x78] sm:$0xff] %v768_v63 }
 0x1ef   :  { %782 = vst [vmem:[%s1276_s6 + $0x68] sm:$0xff] %v766_v0 }

// kernel: simple_graphsage_forward.6
= control target key start
LH: loop header
LB: loop body
LE: loop exit
PB: predicated region body
PF: predicated region fallthrough
CT: control target
= control target key end

     0   :  { %s1236_s1 = inlined_call_operand.vmem [shape: bf16[128,128], index: 1, kind: input, shape index: {}, may-alias: {1,2}]   ;;  %s1237_s0 = inlined_call_operand.vmem [shape: bf16[128,128], index: 0, kind: input, shape index: {}]   ;;  %s1238_s4 = inlined_call_operand.vmem [shape: bf16[128,128], index: 4, kind: input, shape index: {}]   ;;  %s1239_s3 = inlined_call_operand.vmem [shape: bf16[128,128], index: 3, kind: input, shape index: {}]   ;;  %s1240_s2 = inlined_call_operand.vmem [shape: bf16[128,128], index: 2, kind: input, shape index: {}, may-alias: {1,2}]   ;;  %s1241_s5 = inlined_call_operand.vmem [shape: f32[1,128], index: 5, kind: input, shape index: {}]   ;;  %s1242_s6 = inlined_call_operand.vmem [shape: f32[128,128], index: 6, kind: output, shape index: {}]  }
   0x1   :  { %v990_v0 = vld [vmem:[%s1236_s1] sm:$0xff]   ;;  %v991_v1 = vld [vmem:[%s1236_s1 + $0x8] sm:$0xff]   ;;  %v992_v2 = vld [vmem:[%s1236_s1 + $0x10] sm:$0xff]  }
   0x2   :  { %862 = vmatprep.subr.bf16.mxu0 %v990_v0  ;;  %v993_v3 = vld [vmem:[%s1236_s1 + $0x18] sm:$0xff]   ;;  %v998_v4 = vld [vmem:[%s1237_s0] sm:$0xff]   ;;  %v995_v6 = vld [vmem:[%s1236_s1 + $0x28] sm:$0xff]  }
   0x3   :  { %863 = vmatpush3.bf16.msra.mxu0 %v990_v0  ;;  %878 = vmatprep.mubr.bf16.mxu0 %v998_v4  ;;  %v994_v5 = vld [vmem:[%s1236_s1 + $0x20] sm:$0xff]   ;;  %v1007_v8 = vld [vmem:[%s1238_s4 + $0x8] sm:$0xff]   ;;  %v996_v9 = vld [vmem:[%s1236_s1 + $0x30] sm:$0xff]  }
   0x4   :  { %864 = vmatprep.subr.bf16.mxu0 %v991_v1  ;;  %v1006_v7 = vld [vmem:[%s1238_s4] sm:$0xff]   ;;  %v1008_v10 = vld [vmem:[%s1238_s4 + $0x10] sm:$0xff]   ;;  %v997_v11 = vld [vmem:[%s1236_s1 + $0x38] sm:$0xff]  }
   0x5   :  { %894 = vmatprep.subr.bf16.mxu1 %v1006_v7  ;;  %v1009_v12 = vld [vmem:[%s1238_s4 + $0x18] sm:$0xff]   ;;  %v1010_v13 = vld [vmem:[%s1238_s4 + $0x20] sm:$0xff]   ;;  %v999_v16 = vld [vmem:[%s1237_s0 + $0x8] sm:$0xff]  }
   0x6   :  { %895 = vmatpush3.bf16.msra.mxu1 %v1006_v7  ;;  %v1017_v14 = vld [vmem:[%s1240_s2] sm:$0xff]   ;;  %v1000_v17 = vld [vmem:[%s1237_s0 + $0x10] sm:$0xff]   ;;  %v1012_v18 = vld [vmem:[%s1238_s4 + $0x28] sm:$0xff]  }
   0x7   :  { %865 = vmatpush3.bf16.msra.mxu0 %v991_v1  ;;  %896 = vmatprep.subr.bf16.mxu1 %v1007_v8  ;;  %v1011_v15 = vld [vmem:[%s1239_s3] sm:$0xff]   ;;  %v1013_v19 = vld [vmem:[%s1239_s3 + $0x8] sm:$0xff]   ;;  %v1014_v20 = vld [vmem:[%s1238_s4 + $0x30] sm:$0xff]  }
   0x8   :  { %866 = vmatprep.subr.bf16.mxu0 %v992_v2  ;;  %910 = vmatprep.mubr.bf16.mxu1 %v1017_v14  ;;  %v1015_v21 = vld [vmem:[%s1239_s3 + $0x10] sm:$0xff]   ;;  %v1001_v22 = vld [vmem:[%s1237_s0 + $0x18] sm:$0xff]   ;;  %v1002_v23 = vld [vmem:[%s1237_s0 + $0x20] sm:$0xff]  }
   0x9   :  { %v1016_v24 = vld [vmem:[%s1238_s4 + $0x38] sm:$0xff]   ;;  %v1020_v26 = vld [vmem:[%s1239_s3 + $0x20] sm:$0xff]   ;;  %v1003_v27 = vld [vmem:[%s1237_s0 + $0x28] sm:$0xff]  }
   0xa   :  { %897 = vmatpush3.bf16.msra.mxu1 %v1007_v8  ;;  %v1018_v25 = vld [vmem:[%s1239_s3 + $0x18] sm:$0xff]   ;;  %v1019_v28 = vld [vmem:[%s1240_s2 + $0x8] sm:$0xff]   ;;  %v1004_v29 = vld [vmem:[%s1237_s0 + $0x30] sm:$0xff]  }
   0xb   :  { %867 = vmatpush3.bf16.msra.mxu0 %v992_v2  ;;  %898 = vmatprep.subr.bf16.mxu1 %v1008_v10  ;;  %v1021_v30 = vld [vmem:[%s1240_s2 + $0x10] sm:$0xff]   ;;  %v1022_v31 = vld [vmem:[%s1239_s3 + $0x28] sm:$0xff]   ;;  %v1005_v33 = vld [vmem:[%s1237_s0 + $0x38] sm:$0xff]  }
   0xc   :  { %868 = vmatprep.subr.bf16.mxu0 %v993_v3  ;;  %v1024_v32 = vld [vmem:[%s1239_s3 + $0x30] sm:$0xff]   ;;  %v1023_v34 = vld [vmem:[%s1240_s2 + $0x18] sm:$0xff]   ;;  %v1026_v36 = vld [vmem:[%s1240_s2 + $0x20] sm:$0xff]  }
   0xd   :  { %v1025_v35 = vld [vmem:[%s1239_s3 + $0x38] sm:$0xff]   ;;  %v1027_v37 = vld [vmem:[%s1240_s2 + $0x28] sm:$0xff]   ;;  %v1028_v38 = vld [vmem:[%s1240_s2 + $0x30] sm:$0xff]  }
   0xe   :  { %899 = vmatpush3.bf16.msra.mxu1 %v1008_v10  ;;  %v1029_v39 = vld [vmem:[%s1240_s2 + $0x38] sm:$0xff]  }
   0xf   :  { %869 = vmatpush3.bf16.msra.mxu0 %v993_v3  ;;  %900 = vmatprep.subr.bf16.mxu1 %v1009_v12 }
  0x10   :  { %870 = vmatprep.subr.bf16.mxu0 %v994_v5 }
  0x12   :  { %901 = vmatpush3.bf16.msra.mxu1 %v1009_v12 }
  0x13   :  { %871 = vmatpush3.bf16.msra.mxu0 %v994_v5  ;;  %902 = vmatprep.subr.bf16.mxu1 %v1010_v13 }
  0x14   :  { %872 = vmatprep.subr.bf16.mxu0 %v995_v6 }
  0x16   :  { %903 = vmatpush3.bf16.msra.mxu1 %v1010_v13 }
  0x17   :  { %873 = vmatpush3.bf16.msra.mxu0 %v995_v6  ;;  %904 = vmatprep.subr.bf16.mxu1 %v1012_v18 }
  0x18   :  { %874 = vmatprep.subr.bf16.mxu0 %v996_v9 }
  0x1a   :  { %905 = vmatpush3.bf16.msra.mxu1 %v1012_v18 }
  0x1b   :  { %875 = vmatpush3.bf16.msra.mxu0 %v996_v9  ;;  %906 = vmatprep.subr.bf16.mxu1 %v1014_v20  ;;  %v813_v9 = vld [vmem:[%s1241_s5] ss:$0 sm:$0xff] }
  0x1c   :  { %876 = vmatprep.subr.bf16.mxu0 %v997_v11 }
  0x1e   :  { %907 = vmatpush3.bf16.msra.mxu1 %v1014_v20 }
  0x1f   :  { %877 = vmatpush3.bf16.msra.mxu0 %v997_v11  ;;  %908 = vmatprep.subr.bf16.mxu1 %v1016_v24 }
  0x20   :  { %926 = vmatprep.subr.bf16.mxu0 %v1011_v15 }
  0x22   :  { %879 = vmatmul.mubr.bf16.vlgmr.msra.gmra.mrb[0].mxu0 %v999_v16  ;;  %909 = vmatpush3.bf16.msra.mxu1 %v1016_v24 }
  0x23   :  { %882 = vmatprep.mubr.bf16.mxu0 %v1000_v17  ;;  %927 = vmatpush3.bf16.msra.mxu0 %v1011_v15 }
  0x24   :  { %928 = vmatprep.subr.bf16.mxu0 %v1013_v19  ;;  %958 = vmatprep.subr.bf16.mxu1 %v1011_v15 }
  0x25   :  { %911 = vmatmul.mubr.bf16.vlgmr.msra.gmra.mrb[0].mxu1 %v1019_v28 }
  0x26   :  { %966 = vmatpush3.bf16.msra.mxu1 %v1011_v15  ;;  %914 = vmatprep.mubr.bf16.mxu1 %v1021_v30 }
  0x27   :  { %929 = vmatpush3.bf16.msra.mxu0 %v1013_v19  ;;  %959 = vmatprep.subr.bf16.mxu1 %v1013_v19 }
  0x28   :  { %930 = vmatprep.subr.bf16.mxu0 %v1015_v21 }
  0x2a   :  { %883 = vmatmul.mubr.bf16.gmra.mrb[4].mxu0 %v1001_v22  ;;  %967 = vmatpush3.bf16.msra.mxu1 %v1013_v19 }
  0x2b   :  { %886 = vmatprep.mubr.bf16.mxu0 %v1002_v23  ;;  %931 = vmatpush3.bf16.msra.mxu0 %v1015_v21 }
  0x2c   :  { %932 = vmatprep.subr.bf16.mxu0 %v1018_v25  ;;  %960 = vmatprep.subr.bf16.mxu1 %v1015_v21 }
  0x2d   :  { %915 = vmatmul.mubr.bf16.gmra.mrb[4].mxu1 %v1023_v34 }
  0x2e   :  { %968 = vmatpush3.bf16.msra.mxu1 %v1015_v21  ;;  %918 = vmatprep.mubr.bf16.mxu1 %v1026_v36 }
  0x2f   :  { %933 = vmatpush3.bf16.msra.mxu0 %v1018_v25  ;;  %961 = vmatprep.subr.bf16.mxu1 %v1018_v25 }
  0x30   :  { %934 = vmatprep.subr.bf16.mxu0 %v1020_v26 }
  0x32   :  { %887 = vmatmul.mubr.bf16.gmra.mrb[8].mxu0 %v1003_v27  ;;  %969 = vmatpush3.bf16.msra.mxu1 %v1018_v25 }
  0x33   :  { %890 = vmatprep.mubr.bf16.mxu0 %v1004_v29  ;;  %935 = vmatpush3.bf16.msra.mxu0 %v1020_v26 }
  0x34   :  { %936 = vmatprep.subr.bf16.mxu0 %v1022_v31  ;;  %962 = vmatprep.subr.bf16.mxu1 %v1020_v26 }
  0x35   :  { %919 = vmatmul.mubr.bf16.gmra.mrb[8].mxu1 %v1027_v37 }
  0x36   :  { %970 = vmatpush3.bf16.msra.mxu1 %v1020_v26  ;;  %922 = vmatprep.mubr.bf16.mxu1 %v1028_v38 }
  0x37   :  { %937 = vmatpush3.bf16.msra.mxu0 %v1022_v31  ;;  %963 = vmatprep.subr.bf16.mxu1 %v1022_v31 }
  0x38   :  { %938 = vmatprep.subr.bf16.mxu0 %v1024_v32 }
  0x3a   :  { %891 = vmatmul.mubr.bf16.gmra.mrb[12].mxu0 %v1005_v33  ;;  %971 = vmatpush3.bf16.msra.mxu1 %v1022_v31 }
  0x3b   :  { %939 = vmatpush3.bf16.msra.mxu0 %v1024_v32  ;;  %964 = vmatprep.subr.bf16.mxu1 %v1024_v32 }
  0x3c   :  { %940 = vmatprep.subr.bf16.mxu0 %v1025_v35 }
  0x3d   :  { %923 = vmatmul.mubr.bf16.gmra.mrb[12].mxu1 %v1029_v39 }
  0x3e   :  { %972 = vmatpush3.bf16.msra.mxu1 %v1024_v32 }
  0x3f   :  { %965 = vmatprep.subr.bf16.mxu1 %v1025_v35  ;;  %941 = vmatpush3.bf16.msra.mxu0 %v1025_v35 }
  0x42   :  { %973 = vmatpush3.bf16.msra.mxu1 %v1025_v35 }
  0xf5   :  { %v880_v40 = vpop.f32.mrb[0].mxu0 }
  0xf6   :  { %v222_v41 = vpop.f32.mrb[1].mxu0 }
  0xf7   :  { %v881_v42 = vpop.f32.mrb[2].mxu0 }
  0xf8   :  { %v337_v43 = vpack.c.bf16 %v881_v42, %v880_v40  ;;  %v225_v44 = vpop.f32.mrb[3].mxu0  ;;  %v912_v53 = vpop.f32.mrb[0].mxu1 }
  0xf9   :  { %v336_v45 = vpack.c.bf16 %v225_v44, %v222_v41  ;;  %v522_v55 = vpop.f32.mrb[1].mxu1 }
  0xfa   :  { %v913_v57 = vpop.f32.mrb[2].mxu1 }
  0xfb   :  { %942 = vmatprep.mubr.bf16.mxu0 %v336_v45  ;;  %v525_v60 = vpop.f32.mrb[3].mxu1 }
  0xfc   :  { %943 = vmatmul.mubr.bf16.vlgmr.msra.gmra.mrb[16].mxu0 %v337_v43 }
  0xfd   :  { %v884_v46 = vpop.f32.mrb[4].mxu0 }
  0xfe   :  { %v238_v47 = vpop.f32.mrb[5].mxu0 }
  0xff   :  { %v885_v48 = vpop.f32.mrb[6].mxu0 }
 0x100   :  { %v339_v49 = vpack.c.bf16 %v885_v48, %v884_v46  ;;  %v241_v50 = vpop.f32.mrb[7].mxu0  ;;  %v916_v63 = vpop.f32.mrb[4].mxu1 }
 0x101   :  { %v338_v51 = vpack.c.bf16 %v241_v50, %v238_v47  ;;  %v538_v1 = vpop.f32.mrb[5].mxu1 }
 0x102   :  { %v917_v3 = vpop.f32.mrb[6].mxu1 }
 0x103   :  { %946 = vmatprep.mubr.bf16.mxu0 %v338_v51  ;;  %v541_v6 = vpop.f32.mrb[7].mxu1 }
 0x104   :  { %947 = vmatmul.mubr.bf16.gmra.mrb[20].mxu0 %v339_v49 }
 0x105   :  { %v888_v52 = vpop.f32.mrb[8].mxu0 }
 0x106   :  { %v254_v54 = vpop.f32.mrb[9].mxu0 }
 0x107   :  { %v889_v56 = vpop.f32.mrb[10].mxu0 }
 0x108   :  { %v341_v58 = vpack.c.bf16 %v889_v56, %v888_v52  ;;  %v257_v59 = vpop.f32.mrb[11].mxu0 }
 0x109   :  { %v340_v61 = vpack.c.bf16 %v257_v59, %v254_v54 }
 0x10b   :  { %950 = vmatprep.mubr.bf16.mxu1 %v340_v61 }
 0x10c   :  { %951 = vmatmul.mubr.bf16.vlgmr.msra.gmra.mrb[8].mxu1 %v341_v58 }
 0x10d   :  { %v892_v62 = vpop.f32.mrb[12].mxu0 }
 0x10e   :  { %v270_v0 = vpop.f32.mrb[13].mxu0 }
 0x10f   :  { %v893_v2 = vpop.f32.mrb[14].mxu0 }
 0x110   :  { %v343_v4 = vpack.c.bf16 %v893_v2, %v892_v62  ;;  %v273_v5 = vpop.f32.mrb[15].mxu0 }
 0x111   :  { %v342_v7 = vpack.c.bf16 %v273_v5, %v270_v0 }
 0x113   :  { %954 = vmatprep.mubr.bf16.mxu1 %v342_v7 }
 0x114   :  { %955 = vmatmul.mubr.bf16.gmra.mrb[12].mxu1 %v343_v4 }
 0x1cf   :  { %v944_v8 = vpop.f32.mrb[16].mxu0 }
 0x1d0   :  { %v676_v10 = vadd.f32 %v944_v8, %v912_v53  ;;  %v667_v11 = vpop.f32.mrb[17].mxu0 }
 0x1d1   :  { %v668_v12 = vadd.f32 %v667_v11, %v522_v55  ;;  %v945_v13 = vpop.f32.mrb[18].mxu0 }
 0x1d2   :  { %v739_v14 = vadd.f32 %v813_v9, %v676_v10  ;;  %v679_v15 = vadd.f32 %v945_v13, %v913_v57  ;;  %v670_v16 = vpop.f32.mrb[19].mxu0 }
 0x1d3   :  { %v737_v17 = vadd.f32 %v813_v9, %v668_v12  ;;  %v671_v18 = vadd.f32 %v670_v16, %v525_v60 }
 0x1d4   :  { %755 = vst [vmem:[%s1242_s6 + $0x10] sm:$0xff] %v739_v14  ;;  %v740_v19 = vadd.f32 %v813_v9, %v679_v15 }
 0x1d5   :  { %753 = vst [vmem:[%s1242_s6] sm:$0xff] %v737_v17  ;;  %v738_v20 = vadd.f32 %v813_v9, %v671_v18 }
 0x1d6   :  { %756 = vst [vmem:[%s1242_s6 + $0x18] sm:$0xff] %v740_v19 }
 0x1d7   :  { %754 = vst [vmem:[%s1242_s6 + $0x8] sm:$0xff] %v738_v20  ;;  %v948_v21 = vpop.f32.mrb[20].mxu0 }
 0x1d8   :  { %v692_v22 = vadd.f32 %v948_v21, %v916_v63  ;;  %v683_v23 = vpop.f32.mrb[21].mxu0 }
 0x1d9   :  { %v684_v24 = vadd.f32 %v683_v23, %v538_v1  ;;  %v949_v25 = vpop.f32.mrb[22].mxu0 }
 0x1da   :  { %v743_v26 = vadd.f32 %v813_v9, %v692_v22  ;;  %v695_v27 = vadd.f32 %v949_v25, %v917_v3  ;;  %v686_v28 = vpop.f32.mrb[23].mxu0 }
 0x1db   :  { %v741_v29 = vadd.f32 %v813_v9, %v684_v24  ;;  %v687_v30 = vadd.f32 %v686_v28, %v541_v6 }
 0x1dc   :  { %759 = vst [vmem:[%s1242_s6 + $0x30] sm:$0xff] %v743_v26  ;;  %v744_v31 = vadd.f32 %v813_v9, %v695_v27 }
 0x1dd   :  { %757 = vst [vmem:[%s1242_s6 + $0x20] sm:$0xff] %v741_v29  ;;  %v742_v32 = vadd.f32 %v813_v9, %v687_v30 }
 0x1de   :  { %760 = vst [vmem:[%s1242_s6 + $0x38] sm:$0xff] %v744_v31 }
 0x1df   :  { %758 = vst [vmem:[%s1242_s6 + $0x28] sm:$0xff] %v742_v32  ;;  %v952_v33 = vpop.f32.mrb[8].mxu1 }
 0x1e0   :  { %v747_v34 = vadd.f32 %v952_v33, %v813_v9  ;;  %v699_v35 = vpop.f32.mrb[9].mxu1 }
 0x1e1   :  { %v745_v36 = vadd.f32 %v813_v9, %v699_v35  ;;  %v953_v37 = vpop.f32.mrb[10].mxu1 }
 0x1e2   :  { %763 = vst [vmem:[%s1242_s6 + $0x50] sm:$0xff] %v747_v34  ;;  %v748_v38 = vadd.f32 %v953_v37, %v813_v9  ;;  %v702_v39 = vpop.f32.mrb[11].mxu1 }
 0x1e3   :  { %761 = vst [vmem:[%s1242_s6 + $0x40] sm:$0xff] %v745_v36  ;;  %v746_v40 = vadd.f32 %v813_v9, %v702_v39 }
 0x1e4   :  { %764 = vst [vmem:[%s1242_s6 + $0x58] sm:$0xff] %v748_v38 }
 0x1e5   :  { %762 = vst [vmem:[%s1242_s6 + $0x48] sm:$0xff] %v746_v40 }
 0x1e7   :  { %v956_v41 = vpop.f32.mrb[12].mxu1 }
 0x1e8   :  { %v751_v42 = vadd.f32 %v956_v41, %v813_v9  ;;  %v715_v43 = vpop.f32.mrb[13].mxu1 }
 0x1e9   :  { %v749_v44 = vadd.f32 %v813_v9, %v715_v43  ;;  %v957_v45 = vpop.f32.mrb[14].mxu1 }
 0x1ea   :  { %767 = vst [vmem:[%s1242_s6 + $0x70] sm:$0xff] %v751_v42  ;;  %v752_v46 = vadd.f32 %v957_v45, %v813_v9  ;;  %v718_v47 = vpop.f32.mrb[15].mxu1 }
 0x1eb   :  { %765 = vst [vmem:[%s1242_s6 + $0x60] sm:$0xff] %v749_v44  ;;  %v750_v48 = vadd.f32 %v813_v9, %v718_v47 }
 0x1ec   :  { %768 = vst [vmem:[%s1242_s6 + $0x78] sm:$0xff] %v752_v46 }
 0x1ed   :  { %766 = vst [vmem:[%s1242_s6 + $0x68] sm:$0xff] %v750_v48 }

// kernel: simple_graphsage_forward.7
= control target key start
LH: loop header
LB: loop body
LE: loop exit
PB: predicated region body
PF: predicated region fallthrough
CT: control target
= control target key end

     0   :  { %v526_v0 = vmov 0.0   ;;  %vm527_vm0 = vmmov 0   ;;  %s688_s3 = inlined_call_operand.vmem [shape: bf16[128,128], index: 3, kind: input, shape index: {}]   ;;  %s689_s2 = inlined_call_operand.vmem [shape: bf16[128,128], index: 2, kind: input, shape index: {}]   ;;  %s690_s1 = inlined_call_operand.vmem [shape: bf16[16,128], index: 1, kind: input, shape index: {}]   ;;  %s691_s0 = inlined_call_operand.vmem [shape: bf16[16,128], index: 0, kind: input, shape index: {}]   ;;  %s692_s5 = inlined_call_operand.vmem [shape: bf16[128,128], index: 5, kind: input, shape index: {}]   ;;  %s693_s4 = inlined_call_operand.vmem [shape: f32[1,128], index: 4, kind: input, shape index: {}]   ;;  %s694_s6 = inlined_call_operand.vmem [shape: f32[1,128], index: 6, kind: input, shape index: {}]   ;;  %s695_s7 = inlined_call_operand.vmem [shape: f32[16,128], index: 7, kind: output, shape index: {}]  }
   0x1   :  { %438 = vmatprep.subr.bf16.mxu0 %v526_v0  ;;  %458 = vmatprep.subr.bf16.mxu1 %v526_v0  ;;  %v500_v1 = vld [vmem:[%s688_s3] sm:$0xff]   ;;  %v502_v3 = vld [vmem:[%s688_s3 + $0x8] sm:$0xff]   ;;  %v504_v5 = vld [vmem:[%s688_s3 + $0x10] sm:$0xff]  }
   0x2   :  { %v501_v2 = vld [vmem:[%s689_s2] sm:$0xff]   ;;  %454 = vmatprep.mubr.msk.bf16.mxu0 %vm527_vm0, %v526_v0  ;;  %474 = vmatprep.mubr.msk.bf16.mxu1 %vm527_vm0, %v526_v0  ;;  %v503_v4 = vld [vmem:[%s689_s2 + $0x8] sm:$0xff]   ;;  %v505_v6 = vld [vmem:[%s689_s2 + $0x10] sm:$0xff]  }
   0x3   :  { %439 = vmatpush3.bf16.msra.mxu0 %v500_v1  ;;  %459 = vmatpush3.bf16.msra.mxu1 %v501_v2  ;;  %v506_v7 = vld [vmem:[%s688_s3 + $0x18] sm:$0xff]   ;;  %v508_v9 = vld [vmem:[%s688_s3 + $0x20] sm:$0xff]   ;;  %v510_v11 = vld [vmem:[%s688_s3 + $0x28] sm:$0xff]  }
   0x4   :  { %440 = vmatprep.subr.bf16.mxu0 %v526_v0  ;;  %460 = vmatprep.subr.bf16.mxu1 %v526_v0  ;;  %v507_v8 = vld [vmem:[%s689_s2 + $0x18] sm:$0xff]   ;;  %v509_v10 = vld [vmem:[%s689_s2 + $0x20] sm:$0xff]   ;;  %v511_v12 = vld [vmem:[%s689_s2 + $0x28] sm:$0xff]  }
   0x5   :  { %v512_v13 = vld [vmem:[%s688_s3 + $0x30] sm:$0xff]   ;;  %v514_v15 = vld [vmem:[%s688_s3 + $0x38] sm:$0xff]   ;;  %v516_v17 = vld [vmem:[%s690_s1] sm:$0xff]  }
   0x6   :  { %v513_v14 = vld [vmem:[%s689_s2 + $0x30] sm:$0xff]   ;;  %v515_v16 = vld [vmem:[%s689_s2 + $0x38] sm:$0xff]   ;;  %v517_v18 = vld [vmem:[%s691_s0] sm:$0xff]  }
   0x7   :  { %441 = vmatpush3.bf16.msra.mxu0 %v502_v3  ;;  %461 = vmatpush3.bf16.msra.mxu1 %v503_v4  ;;  %v518_v19 = vld [vmem:[%s692_s5] sm:$0xff]   ;;  %v519_v20 = vld [vmem:[%s692_s5 + $0x8] sm:$0xff]   ;;  %v520_v21 = vld [vmem:[%s692_s5 + $0x10] sm:$0xff]  }
   0x8   :  { %442 = vmatprep.subr.bf16.mxu0 %v526_v0  ;;  %462 = vmatprep.subr.bf16.mxu1 %v526_v0  ;;  %v521_v22 = vld [vmem:[%s692_s5 + $0x18] sm:$0xff]   ;;  %v522_v23 = vld [vmem:[%s692_s5 + $0x20] sm:$0xff]   ;;  %v523_v24 = vld [vmem:[%s692_s5 + $0x28] sm:$0xff]  }
   0x9   :  { %v524_v25 = vld [vmem:[%s692_s5 + $0x30] sm:$0xff]   ;;  %v525_v26 = vld [vmem:[%s692_s5 + $0x38] sm:$0xff]   ;;  %v401_v29 = vld [vmem:[%s693_s4] ss:$0 sm:$0xff] }
   0xa   :  { %v402_v43 = vld [vmem:[%s694_s6] ss:$0 sm:$0xff] }
   0xb   :  { %443 = vmatpush3.bf16.msra.mxu0 %v504_v5  ;;  %463 = vmatpush3.bf16.msra.mxu1 %v505_v6 }
   0xc   :  { %444 = vmatprep.subr.bf16.mxu0 %v526_v0  ;;  %464 = vmatprep.subr.bf16.mxu1 %v526_v0 }
   0xf   :  { %445 = vmatpush3.bf16.msra.mxu0 %v506_v7  ;;  %465 = vmatpush3.bf16.msra.mxu1 %v507_v8 }
  0x10   :  { %446 = vmatprep.subr.bf16.mxu0 %v526_v0  ;;  %466 = vmatprep.subr.bf16.mxu1 %v526_v0 }
  0x13   :  { %447 = vmatpush3.bf16.msra.mxu0 %v508_v9  ;;  %467 = vmatpush3.bf16.msra.mxu1 %v509_v10 }
  0x14   :  { %448 = vmatprep.subr.bf16.mxu0 %v526_v0  ;;  %468 = vmatprep.subr.bf16.mxu1 %v526_v0 }
  0x17   :  { %449 = vmatpush3.bf16.msra.mxu0 %v510_v11  ;;  %469 = vmatpush3.bf16.msra.mxu1 %v511_v12 }
  0x18   :  { %450 = vmatprep.subr.bf16.mxu0 %v526_v0  ;;  %470 = vmatprep.subr.bf16.mxu1 %v526_v0 }
  0x1b   :  { %451 = vmatpush3.bf16.msra.mxu0 %v512_v13  ;;  %471 = vmatpush3.bf16.msra.mxu1 %v513_v14 }
  0x1c   :  { %452 = vmatprep.subr.bf16.mxu0 %v526_v0  ;;  %472 = vmatprep.subr.bf16.mxu1 %v526_v0 }
  0x1f   :  { %453 = vmatpush3.bf16.msra.mxu0 %v514_v15  ;;  %473 = vmatpush3.bf16.msra.mxu1 %v515_v16 }
  0x20   :  { %478 = vmatprep.subr.bf16.mxu0 %v526_v0 }
  0x22   :  { %455 = vmatmul.mubr.bf16.vlgmr.msra.gmra.mrb[0].mxu0 %v516_v17  ;;  %475 = vmatmul.mubr.bf16.vlgmr.msra.gmra.mrb[0].mxu1 %v517_v18 }
  0x23   :  { %479 = vmatpush3.bf16.msra.mxu0 %v518_v19  ;;  %494 = vmatprep.mubr.msk.bf16.mxu0 %vm527_vm0, %v526_v0 }
  0x24   :  { %480 = vmatprep.subr.bf16.mxu0 %v526_v0 }
  0x27   :  { %481 = vmatpush3.bf16.msra.mxu0 %v519_v20 }
  0x28   :  { %482 = vmatprep.subr.bf16.mxu0 %v526_v0 }
  0x2b   :  { %483 = vmatpush3.bf16.msra.mxu0 %v520_v21 }
  0x2c   :  { %484 = vmatprep.subr.bf16.mxu0 %v526_v0 }
  0x2f   :  { %485 = vmatpush3.bf16.msra.mxu0 %v521_v22 }
  0x30   :  { %486 = vmatprep.subr.bf16.mxu0 %v526_v0 }
  0x33   :  { %487 = vmatpush3.bf16.msra.mxu0 %v522_v23 }
  0x34   :  { %488 = vmatprep.subr.bf16.mxu0 %v526_v0 }
  0x37   :  { %489 = vmatpush3.bf16.msra.mxu0 %v523_v24 }
  0x38   :  { %490 = vmatprep.subr.bf16.mxu0 %v526_v0 }
  0x3b   :  { %491 = vmatpush3.bf16.msra.mxu0 %v524_v25 }
  0x3c   :  { %492 = vmatprep.subr.bf16.mxu0 %v526_v0 }
  0x3f   :  { %493 = vmatpush3.bf16.msra.mxu0 %v525_v26 }
  0xf5   :  { %v151_v27 = vpop.f32.mrb[0].mxu0  ;;  %v246_v28 = vpop.f32.mrb[0].mxu1 }
  0xf6   :  { %v456_v30 = vpop.f32.mrb[1].mxu0  ;;  %v247_v31 = vadd.f32 %v246_v28, %v151_v27  ;;  %v476_v32 = vpop.f32.mrb[1].mxu1 }
  0xf7   :  { %v154_v33 = vpop.f32.mrb[2].mxu0  ;;  %v249_v34 = vpop.f32.mrb[2].mxu1 }
  0xf8   :  { %v457_v35 = vpop.f32.mrb[3].mxu0  ;;  %v260_v36 = vadd.f32 %v401_v29, %v247_v31  ;;  %v250_v37 = vadd.f32 %v249_v34, %v154_v33  ;;  %v477_v38 = vpop.f32.mrb[3].mxu1 }
  0xfa   :  { %v261_v39 = vadd.f32 %v401_v29, %v250_v37  ;;  %v262_v40 = vmax.f32 %v260_v36, 0.0 }
  0xfc   :  { %v263_v41 = vmax.f32 %v261_v39, 0.0 }
  0xfe   :  { %v264_v42 = vpack.c.bf16 %v263_v41, %v262_v40 }
 0x100   :  { %495 = vmatmul.mubr.bf16.vlgmr.msra.gmra.mrb[4].mxu0 %v264_v42 }
 0x1d3   :  { %v370_v44 = vpop.f32.mrb[4].mxu0 }
 0x1d4   :  { %v371_v45 = vadd.f32 %v402_v43, %v370_v44  ;;  %v496_v46 = vpop.f32.mrb[5].mxu0 }
 0x1d5   :  { %v373_v47 = vpop.f32.mrb[6].mxu0 }
 0x1d6   :  { %377 = vst [vmem:[%s695_s7] sm:$0xff] %v371_v45  ;;  %v374_v48 = vadd.f32 %v402_v43, %v373_v47  ;;  %v497_v49 = vpop.f32.mrb[7].mxu0 }
 0x1d8   :  { %378 = vst [vmem:[%s695_s7 + $0x8] sm:$0xff] %v374_v48 }

</bundles_post_ra>
